<compile_context>
chip_gen: v7x
topology: tpu7x:2x2x1
jax: 0.10.0
libtpu: 0.0.40
codegen_flags: <defaults>
</compile_context>

<pallas_src>
import functools

import jax
import jax.numpy as jnp
from jax.experimental import pallas as pl
from jax.experimental.pallas import tpu as pltpu

IN_FEATURES = 18
HIDDEN = 2
OUT_FEATURES = 1

# Per batch row of a tile: x block (tb,18) and out block (tb,1) are both
# lane-padded to 128 in VMEM (512 B/row each), and both are double-buffered.
_VMEM_BYTES_PER_ROW = 2 * 2 * 128 * 4  # = 2048 bytes / row


def _round_up(n, m):
    return ((n + m - 1) // m) * m


def _vmem_capacity_bytes() -> int:
    """Per-core VMEM capacity; conservative fallback if the query is unavailable."""
    try:
        return int(pltpu.get_tpu_info().vmem_capacity_bytes)
    except Exception:
        return 64 << 20  # v7x per-TensorCore VMEM (smallest current generation)


def _evenflow_kernel(x_ref, w_ref, b_ref, o_ref):
    # x_ref: (tb, 18) f32  -- batch rows on sublanes, native row-major layout
    # w_ref: (18, 1)  f32  -- folded weight column W1 @ W2
    # b_ref: (1, 1)   f32  -- folded bias scalar, in SMEM
    # o_ref: (tb, 1)  f32
    # Single MXU dot: one pass over the x vregs, no (tb,18) product
    # materialization, no XLU reduce tree.
    y = jnp.dot(x_ref[...], w_ref[...], preferred_element_type=jnp.float32)
    o_ref[...] = (y + b_ref[0, 0]).astype(o_ref.dtype)


@functools.partial(jax.jit, static_argnames=("block_b",))
def evenflow_forward(x, w1, b1, w2, b2, *, block_b=16384):
    """x: (B, 18); weights stored as (in, out). Returns (B, 1) in x.dtype."""
    B = x.shape[0]
    orig_dtype = x.dtype
    x = x.astype(jnp.float32)  # no-op for f32 inputs

    # Fold the two affine layers (exact: no nonlinearity in between).
    w_eff = jnp.dot(w1, w2, preferred_element_type=jnp.float32)            # (18, 1)
    b_eff = (jnp.dot(b1, w2, preferred_element_type=jnp.float32) + b2)     # (1,)
    b_eff = b_eff.reshape(1, 1).astype(jnp.float32)                        # (1, 1)

    # --- batch-tile selection: multiple of 128, per-generation VMEM cap ------
    cap = _vmem_capacity_bytes()
    tb_vmem_cap = max(128, ((cap - (12 << 20)) // _VMEM_BYTES_PER_ROW) // 128 * 128)
    tb = _round_up(max(int(block_b), 128), 128)
    tb = min(tb, tb_vmem_cap)                               # fit VMEM (all gens)
    tb = min(tb, _round_up(B, 128))                         # don't exceed the batch
    tb = min(tb, max(128, _round_up(pl.cdiv(B, 2), 128)))   # >=2 grid steps when possible
    grid = pl.cdiv(B, tb)                                   # partial last block is masked

    vmem_limit = int(
        min(max(32 << 20, tb * _VMEM_BYTES_PER_ROW + (4 << 20)), cap - (4 << 20))
    )

    out = pl.pallas_call(
        _evenflow_kernel,
        out_shape=jax.ShapeDtypeStruct((B, OUT_FEATURES), jnp.float32),
        grid=(grid,),
        in_specs=[
            pl.BlockSpec((tb, IN_FEATURES), lambda i: (i, 0)),
            pl.BlockSpec((IN_FEATURES, OUT_FEATURES), lambda i: (0, 0)),
            pl.BlockSpec(memory_space=pltpu.MemorySpace.SMEM),
        ],
        out_specs=pl.BlockSpec((tb, OUT_FEATURES), lambda i: (i, 0)),
        compiler_params=pltpu.CompilerParams(
            dimension_semantics=("parallel",),
            vmem_limit_bytes=vmem_limit,
        ),
    )(x, w_eff, b_eff)

    return out.astype(orig_dtype)


def init_params(key):
    """Deterministic init mimicking nn.Linear defaults (uniform +-1/sqrt(fan_in))."""
    k1, k2, k3, k4 = jax.random.split(key, 4)
    bound1 = 1.0 / jnp.sqrt(jnp.float32(IN_FEATURES))
    bound2 = 1.0 / jnp.sqrt(jnp.float32(HIDDEN))
    # Stored as (in, out) -- transpose of torch's (out, in) -- so math is x @ W.
    w1 = jax.random.uniform(k1, (IN_FEATURES, HIDDEN), jnp.float32, -bound1, bound1)
    b1 = jax.random.uniform(k2, (HIDDEN,), jnp.float32, -bound1, bound1)
    w2 = jax.random.uniform(k3, (HIDDEN, OUT_FEATURES), jnp.float32, -bound2, bound2)
    b2 = jax.random.uniform(k4, (OUT_FEATURES,), jnp.float32, -bound2, bound2)
    return w1, b1, w2, b2


if __name__ == "__main__":
    key = jax.random.PRNGKey(0)
    k_params, k_x1, k_x2 = jax.random.split(key, 3)
    w1, b1, w2, b2 = init_params(k_params)

    # Single-tile path: one partial 128-row block (8 valid rows).
    B = 8
    x = jax.random.normal(k_x1, (B, IN_FEATURES), jnp.float32)
    out = jax.block_until_ready(evenflow_forward(x, w1, b1, w2, b2))
    ref = (x @ w1 + b1) @ w2 + b2
    assert out.shape == (B, OUT_FEATURES)
    assert jnp.allclose(out, ref, atol=1e-5, rtol=1e-5)

    # Multi-step grid + masked partial last block: tb=256, grid=cdiv(300,256)=2.
    B2 = 300
    x2 = jax.random.normal(k_x2, (B2, IN_FEATURES), jnp.float32)
    out2 = jax.block_until_ready(
        evenflow_forward(x2, w1, b1, w2, b2, block_b=512)
    )
    ref2 = (x2 @ w1 + b1) @ w2 + b2
    assert out2.shape == (B2, OUT_FEATURES)
    assert jnp.allclose(out2, ref2, atol=1e-5, rtol=1e-5)

    print("KERNEL_OK")
</pallas_src>

<mosaic_0001>
module attributes {stable_mosaic.version = 11 : i64} {
  func.func @_evenflow_kernel(%arg0: i32, %arg1: memref<128x18xf32, #tpu.memory_space<vmem>>, %arg2: memref<18x1xf32, #tpu.memory_space<vmem>>, %arg3: memref<1x1xf32, #tpu.memory_space<smem>>, %arg4: memref<128x1xf32, #tpu.memory_space<vmem>>) attributes {dimension_semantics = [#tpu.dimension_semantics<parallel>], iteration_bounds = array<i64: 1>, scalar_prefetch = 0 : i64, scratch_operands = 0 : i64, tpu.core_type = #tpu.core_type<tc>, window_params = [{transform_indices = @transform_0, window_bounds = array<i64: 128, 18>}, {pipeline_mode = #tpu.pipeline_mode<synchronous>, transform_indices = @transform_1, window_bounds = array<i64: 18, 1>}, {transform_indices = @transform_2, window_bounds = array<i64: 1, 1>}, {transform_indices = @transform_3, window_bounds = array<i64: 128, 1>}]} {
    %c0 = arith.constant 0 : index
    %c0_0 = arith.constant 0 : index
    %0 = vector.load %arg1[%c0, %c0_0] : memref<128x18xf32, #tpu.memory_space<vmem>>, vector<128x18xf32>
    %c0_1 = arith.constant 0 : index
    %c0_2 = arith.constant 0 : index
    %1 = vector.load %arg2[%c0_1, %c0_2] : memref<18x1xf32, #tpu.memory_space<vmem>>, vector<18x1xf32>
    %cst = arith.constant dense<0.000000e+00> : vector<128x1xf32>
    %2 = tpu.matmul %0, %1, %cst {dimension_numbers = #tpu.dot_dimension_numbers<[1], [0], [0], [1], [0, 0, 1, 1], [], []>} : vector<128x18xf32>, vector<18x1xf32>, vector<128x1xf32> -> vector<128x1xf32>
    %c0_3 = arith.constant 0 : index
    %c0_4 = arith.constant 0 : index
    %3 = memref.load %arg3[%c0_3, %c0_4] : memref<1x1xf32, #tpu.memory_space<smem>>
    %4 = vector.broadcast %3 : f32 to vector<128x1xf32>
    %5 = arith.addf %2, %4 : vector<128x1xf32>
    %c0_5 = arith.constant 0 : index
    %c0_6 = arith.constant 0 : index
    %6 = vector.load %arg4[%c0_5, %c0_6] : memref<128x1xf32, #tpu.memory_space<vmem>>, vector<128x1xf32>
    tpu.vector_store %arg4[%c0_5, %c0_6], %5 {strides = array<i32>} : memref<128x1xf32, #tpu.memory_space<vmem>>, vector<128x1xf32>,
    return
  }
  func.func @transform_0(%arg0: i32) -> (i32, i32) {
    %c0_i32 = arith.constant 0 : i32
    %c0_i32_0 = arith.constant 0 : i32
    return %arg0, %c0_i32 : i32, i32
  }
  func.func @transform_1(%arg0: i32) -> (i32, i32) {
    %c0_i32 = arith.constant 0 : i32
    %c0_i32_0 = arith.constant 0 : i32
    %c0_i32_1 = arith.constant 0 : i32
    return %c0_i32, %c0_i32_0 : i32, i32
  }
  func.func @transform_2(%arg0: i32) -> (i32, i32) {
    %c0_i32 = arith.constant 0 : i32
    %c0_i32_0 = arith.constant 0 : i32
    %c0_i32_1 = arith.constant 0 : i32
    return %c0_i32, %c0_i32_0 : i32, i32
  }
  func.func @transform_3(%arg0: i32) -> (i32, i32) {
    %c0_i32 = arith.constant 0 : i32
    %c0_i32_0 = arith.constant 0 : i32
    return %arg0, %c0_i32 : i32, i32
  }
}

</mosaic_0001>

<bundles_post_ra>
// kernel: evenflow_forward.1
= control target key start
LH: loop header
LB: loop body
LE: loop exit
PB: predicated region body
PF: predicated region fallthrough
CT: control target
= control target key end

     0   :  { %vm36_vm0 = vcmask 146432   ;;  %vm85_vm1 = vcmask 1041408   ;;  %vm234_vm2 = vcmask 7168   ;;  %s464_s0 = inlined_call_operand.vmem [shape: f32[8,18], index: 0, kind: input, shape index: {}]   ;;  %s465_s1 = inlined_call_operand.vmem [shape: f32[18,1], index: 1, kind: input, shape index: {}]   ;;  %s466_s2 = inlined_call_operand.<no memory space> [shape: f32[1,1], index: 2, kind: input, shape index: {}]   ;;  %s467_s3 = inlined_call_operand.vmem [shape: f32[8,1], index: 3, kind: output, shape index: {}]  }
   0x1   :  { %v31_v0 = vld [vmem:[%s465_s1] sm:$0xff]  ;;  %v32_v1 = vld [vmem:[%s465_s1 + $0x8] sm:$0xff]  ;;  %v33_v5 = vld [vmem:[%s465_s1 + $0x10] sm:$0x3]  ;;  %v35_v20 = vstv %s466_s2 }
   0x2   :  { %v357_v2 = vpack.c.bf16 %v32_v1, %v31_v0  ;;  %v15_v3 = vld [vmem:[%s464_s0] sm:$0xff]  ;;  %v16_v6 = vld [vmem:[%s464_s0 + $0x8] sm:$0xff]  ;;  %v17_v8 = vld [vmem:[%s464_s0 + $0x10] sm:$0xff] }
   0x3   :  { %v23_v4 = vld [vmem:[%s464_s0 + $0x40] sm:$0xff]  ;;  %333 = vmatprep.mubr.msk.f32.mxu0 %vm36_vm0, %v15_v3  ;;  %v24_v7 = vld [vmem:[%s464_s0 + $0x48] sm:$0xff]  ;;  %v25_v9 = vld [vmem:[%s464_s0 + $0x50] sm:$0xff] }
   0x4   :  { %345 = vmatprep.mubr.msk.f32.mxu1 %vm36_vm0, %v23_v4  ;;  %358 = vmatprep.subr.bf16.mxu0 %v357_v2  ;;  %v18_v10 = vld [vmem:[%s464_s0 + $0x18] sm:$0xff]  ;;  %v19_v12 = vld [vmem:[%s464_s0 + $0x20] sm:$0xff]  ;;  %v20_v14 = vld [vmem:[%s464_s0 + $0x28] sm:$0xff] }
   0x5   :  { %361 = vmatprep.subr.bf16.mxu1 %v357_v2  ;;  %360 = vmatpush3.bf16.msra.mxu0 %v357_v2  ;;  %v26_v11 = vld [vmem:[%s464_s0 + $0x58] sm:$0xff]  ;;  %v27_v13 = vld [vmem:[%s464_s0 + $0x60] sm:$0xff]  ;;  %v28_v15 = vld [vmem:[%s464_s0 + $0x68] sm:$0xff] }
   0x6   :  { %363 = vmatpush3.bf16.msra.mxu1 %v357_v2  ;;  %331 = vmatprep.subr.msk.mxu0 %vm85_vm1, %v33_v5  ;;  %v21_v16 = vld [vmem:[%s464_s0 + $0x30] sm:$0xff]  ;;  %v22_v18 = vld [vmem:[%s464_s0 + $0x38] sm:$0xff] }
   0x7   :  { %362 = vmatprep.subr.msk.mxu1 %vm85_vm1, %v33_v5  ;;  %v29_v17 = vld [vmem:[%s464_s0 + $0x70] sm:$0xff]  ;;  %v30_v19 = vld [vmem:[%s464_s0 + $0x78] sm:$0xff] }
   0x9   :  { %332 = vmatpush3.msk.msra.mxu0 %vm85_vm1, %v33_v5 }
   0xa   :  { %364 = vmatpush3.msk.msra.mxu1 %vm85_vm1, %v33_v5  ;;  %334 = vmatmul.mubr.msk.f32.vlgmr.msra.gmra.mrb[0].mxu0 %vm36_vm0, %v16_v6 }
   0xb   :  { %346 = vmatmul.mubr.msk.f32.vlgmr.msra.gmra.mrb[0].mxu1 %vm36_vm0, %v24_v7  ;;  %336 = vmatprep.mubr.msk.f32.mxu0 %vm36_vm0, %v17_v8 }
   0xc   :  { %348 = vmatprep.mubr.msk.f32.mxu1 %vm36_vm0, %v25_v9 }
   0xe   :  { %337 = vmatmul.mubr.msk.f32.gmra.mrb[2].mxu0 %vm36_vm0, %v18_v10 }
   0xf   :  { %349 = vmatmul.mubr.msk.f32.gmra.mrb[2].mxu1 %vm36_vm0, %v26_v11  ;;  %339 = vmatprep.mubr.msk.f32.mxu0 %vm36_vm0, %v19_v12 }
  0x10   :  { %351 = vmatprep.mubr.msk.f32.mxu1 %vm36_vm0, %v27_v13 }
  0x12   :  { %340 = vmatmul.mubr.msk.f32.gmra.mrb[4].mxu0 %vm36_vm0, %v20_v14 }
  0x13   :  { %352 = vmatmul.mubr.msk.f32.gmra.mrb[4].mxu1 %vm36_vm0, %v28_v15  ;;  %342 = vmatprep.mubr.msk.f32.mxu0 %vm36_vm0, %v21_v16 }
  0x14   :  { %354 = vmatprep.mubr.msk.f32.mxu1 %vm36_vm0, %v29_v17 }
  0x16   :  { %343 = vmatmul.mubr.msk.f32.gmra.mrb[6].mxu0 %vm36_vm0, %v22_v18 }
  0x17   :  { %355 = vmatmul.mubr.msk.f32.gmra.mrb[6].mxu1 %vm36_vm0, %v30_v19 }
  0xdd   :  { %v335_v21 = vpop.f32.mrb[0].mxu0 }
  0xde   :  { %v347_v22 = vpop.f32.mrb[0].mxu1  ;;  %v155_v23 = vpop.f32.mrb[1].mxu0 }
  0xdf   :  { %v195_v24 = vpop.f32.mrb[1].mxu1  ;;  %v156_v25 = vadd.f32 %v155_v23, %v35_v20 }
  0xe1   :  { %235 = vst.msk [vmem:[#allocation3] sm:$0xff] %vm234_vm2, %v156_v25  ;;  %v338_v26 = vpop.f32.mrb[2].mxu0 }
  0xe2   :  { %v350_v27 = vpop.f32.mrb[2].mxu1  ;;  %v165_v28 = vpop.f32.mrb[3].mxu0 }
  0xe3   :  { %v205_v29 = vpop.f32.mrb[3].mxu1 }
  0xe5   :  { %v341_v30 = vpop.f32.mrb[4].mxu0 }
  0xe6   :  { %v353_v31 = vpop.f32.mrb[4].mxu1  ;;  %v175_v32 = vpop.f32.mrb[5].mxu0 }
  0xe7   :  { %v215_v33 = vpop.f32.mrb[5].mxu1 }
  0xe8   :  { %v280_v34 = vld [vmem:[#allocation3] sm:$0xff] }
  0xe9   :  { %281 = vst [vmem:[%s467_s3] sm:$0xff] %v280_v34  ;;  %v344_v35 = vpop.f32.mrb[6].mxu0 }
  0xea   :  { %v356_v36 = vpop.f32.mrb[6].mxu1  ;;  %v185_v37 = vpop.f32.mrb[7].mxu0 }
  0xeb   :  { %v225_v38 = vpop.f32.mrb[7].mxu1 }

</bundles_post_ra>
